<compile_context>
chip_gen: v7x
topology: tpu7x:2x2x1
jax: 0.10.0
libtpu: 0.0.40
codegen_flags: <defaults>
</compile_context>

<pallas_src>
import functools

import jax
import jax.numpy as jnp
from jax import lax
from jax.experimental import pallas as pl
from jax.experimental.pallas import tpu as pltpu

EPS = 1e-5
NEG_SLOPE = 0.01


def _round_up(x, m):
    return (x + m - 1) // m * m


def _cdiv(a, b):
    return (a + b - 1) // b


def _vmem_capacity_bytes():
    try:
        cap = int(getattr(pltpu.get_tpu_info(), "vmem_capacity_bytes", 0))
        if cap > 0:
            return cap
    except Exception:
        pass
    return 128 * 1024 * 1024


def _pick_cout_tile(cout):
    """Cout tile <=256 (fills the 256-wide v6e/v7x MXU), multiple of 8.

    Non-divisible Cout is handled by zero-padding the tail channels in the
    wrapper (cdiv grid)."""
    if cout <= 256:
        return _round_up(cout, 8)
    for t in (256, 128):
        if cout % t == 0:
            return t
    return 128


def _conv_tile(x_ref, w_ref, taps, halo, wp, ph, pw, tl):
    """One output tile of the conv: stacked im2col slab + single K=kh*kw*Cin dot.

    x_ref: (1, 1, Cin_pad, TLin) halo'd input block (VMEM)
    w_ref: (Tco, kh*kw*Cin_pad)  tap-stacked weights
    Returns f32 (Tco, TL).
    """
    cin = x_ref.shape[2]
    parts = []
    for (dh, dw) in taps:
        start = halo + (dh - ph) * wp + (dw - pw)       # static lane shift
        parts.append(x_ref[0, 0, :, pl.ds(start, tl)])  # (Cin_pad, TL)
    slab = jnp.concatenate(parts, axis=0)               # (kh*kw*Cin_pad, TL)
    return jnp.dot(w_ref[...], slab, preferred_element_type=jnp.float32)


def _fused_kernel(x_ref, w_ref, g_ref, b_ref, mask_ref, o_ref, *,
                  taps, halo, wp, ph, pw, inv_hw):
    """Single-tile path (whole spatial extent in one L-tile): conv + IN + LeakyReLU."""
    tl = o_ref.shape[2]
    acc = _conv_tile(x_ref, w_ref, taps, halo, wp, ph, pw, tl)   # (tco, TL) f32
    # NOTE: conv bias omitted - cancelled exactly by the InstanceNorm mean.

    # Single masked pass for the statistics: var = E[x^2] - mean^2.
    mask = mask_ref[...]                                          # (1, TL)
    am = acc * mask
    s1 = jnp.sum(am, axis=1, keepdims=True)
    s2 = jnp.sum(am * acc, axis=1, keepdims=True)
    mean = s1 * inv_hw
    var = jnp.maximum(s2 * inv_hw - mean * mean, 0.0)
    scale = lax.rsqrt(var + EPS) * g_ref[...]                     # (tco, 1)
    shift = b_ref[...] - mean * scale
    z = acc * scale + shift
    o_ref[0] = jnp.where(z >= 0, z, NEG_SLOPE * z).astype(o_ref.dtype)


def _conv_stats_kernel(x_ref, w_ref, mask_ref, conv_ref, s1_ref, s2_ref, *,
                       taps, halo, wp, ph, pw):
    """Pass 1 of the tiled path: conv tile + per-channel sum / sum-of-squares
    accumulated across the (innermost, "arbitrary") L axis."""
    l = pl.program_id(2)

    @pl.when(l == 0)
    def _():
        s1_ref[...] = jnp.zeros_like(s1_ref)
        s2_ref[...] = jnp.zeros_like(s2_ref)

    tl = conv_ref.shape[2]
    acc = _conv_tile(x_ref, w_ref, taps, halo, wp, ph, pw, tl)    # (tco, TL) f32
    conv_ref[0] = acc

    mask = mask_ref[...]                                          # (1, TL)
    am = acc * mask
    s1_ref[0] += jnp.sum(am, axis=1, keepdims=True)
    s2_ref[0] += jnp.sum(am * acc, axis=1, keepdims=True)


def _norm_relu_kernel(conv_ref, s1_ref, s2_ref, g_ref, b_ref, o_ref, *, inv_hw):
    """Pass 2 of the tiled path: InstanceNorm + affine + LeakyReLU, one sweep."""
    acc = conv_ref[0]                                             # (tco, TL) f32
    mean = s1_ref[0] * inv_hw                                     # (tco, 1)
    var = jnp.maximum(s2_ref[0] * inv_hw - mean * mean, 0.0)
    scale = lax.rsqrt(var + EPS) * g_ref[...]
    shift = b_ref[...] - mean * scale
    z = acc * scale + shift
    o_ref[0] = jnp.where(z >= 0, z, NEG_SLOPE * z).astype(o_ref.dtype)


def conv_dropout_norm_relu(x_nchw, weight, bias, gamma, beta, *,
                           matmul_dtype=jnp.bfloat16, l_tile=None):
    """x_nchw: (N, Cin, H, W). weight: (Cout, Cin, kh, kw). Returns NCHW.

    matmul_dtype: dtype of the MXU operands (input slab + weights); f32
    accumulation and f32 norm/ReLU epilogue are kept regardless.  bf16 is the
    default (~2x MXU throughput on v6e/v7x, half the slab DMA/VMEM bytes).
    l_tile: optional override of the flattened-spatial tile length.
    """
    N, Cin, H, W = x_nchw.shape
    Cout, Cin_w, kh, kw = weight.shape
    assert Cin_w == Cin
    assert kh % 2 == 1 and kw % 2 == 1, "odd kernel sizes only (nnU-Net default)"
    del bias  # cancelled by the InstanceNorm mean subtraction (see kernels)

    ph, pw = (kh - 1) // 2, (kw - 1) // 2
    Hp, Wp = H + 2 * ph, W + 2 * pw
    Lp = Hp * Wp                              # padded, flattened spatial length
    halo = ph * Wp + pw                       # max |tap shift| in flat coords
    out_dtype = x_nchw.dtype
    out_item = jnp.dtype(out_dtype).itemsize
    in_item = jnp.dtype(matmul_dtype).itemsize
    cap = _vmem_capacity_bytes()

    Cin_pad = _round_up(Cin, 8)               # 8-sublane aligned slab pieces
    KC = kh * kw * Cin_pad
    tco = _pick_cout_tile(Cout)
    Cout_pad = _round_up(Cout, tco)
    n_c = Cout_pad // tco

    # ---- spatial (L) tile size: biggest tile that keeps the per-step VMEM
    # working set within a fraction of physical VMEM (v7x: 64 MiB). ----------
    if l_tile is None:
        per_lane = (2 * Cin_pad * in_item      # halo'd input block (x2 buffers)
                    + KC * in_item             # stacked im2col slab temp
                    + 3 * tco * 4              # f32 conv tile (x2) + dot temp
                    + 2 * tco * out_item)      # output tile (x2 buffers)
        budget = int(min(cap, 128 << 20) * 0.4)
        l_tile = max(512, budget // per_lane // 128 * 128)
    tl_full = _round_up(Lp, 128)
    fused = tl_full <= l_tile
    TL = tl_full if fused else _round_up(l_tile, 128)
    n_l = 1 if fused else _cdiv(Lp, TL)
    Lpad = n_l * TL
    TLin = _round_up(TL + 2 * halo, 128)

    # ---- NCHW-preserving glue: channel pad -> spatial pad -> flatten -> ----
    # ---- halo'd L-blocks in HBM (duplication factor TLin/TL, ~1.1-1.3x) ----
    x_m = x_nchw.astype(matmul_dtype)
    if Cin_pad != Cin:
        x_m = jnp.pad(x_m, ((0, 0), (0, Cin_pad - Cin), (0, 0), (0, 0)))
    x_pad = jnp.pad(x_m, ((0, 0), (0, 0), (ph, ph), (pw, pw)))
    x_flat = x_pad.reshape(N, Cin_pad, Lp)
    L_buf = (n_l - 1) * TL + TLin
    x_buf = jnp.pad(x_flat, ((0, 0), (0, 0), (halo, L_buf - halo - Lp)))
    x_blocks = jnp.stack(
        [lax.slice_in_dim(x_buf, l * TL, l * TL + TLin, axis=2)
         for l in range(n_l)], axis=1)                     # (N, n_l, Cin_pad, TLin)

    # Tap-stacked weights: row (dh*kw + dw)*Cin_pad + ci  <->  weight[:, ci, dh, dw]
    w_p = jnp.pad(weight, ((0, Cout_pad - Cout), (0, Cin_pad - Cin), (0, 0), (0, 0)))
    w2 = jnp.transpose(w_p, (0, 2, 3, 1)).reshape(Cout_pad, KC).astype(matmul_dtype)
    g_col = gamma.reshape(Cout, 1).astype(jnp.float32)
    b_col = beta.reshape(Cout, 1).astype(jnp.float32)
    if Cout_pad != Cout:
        g_col = jnp.pad(g_col, ((0, Cout_pad - Cout), (0, 0)), constant_values=1.0)
        b_col = jnp.pad(b_col, ((0, Cout_pad - Cout), (0, 0)))

    # Valid-position mask over the padded flattened spatial axis (precomputed
    # once; avoids integer div/mod by Wp inside the kernel).
    p = jnp.arange(Lpad)
    row, col = p // Wp, p % Wp
    valid = ((p < Lp) & (row >= ph) & (row < ph + H)
             & (col >= pw) & (col < pw + W))
    mask = valid.astype(jnp.float32).reshape(1, Lpad)

    taps = tuple((dh, dw) for dh in range(kh) for dw in range(kw))
    inv_hw = 1.0 / float(H * W)
    conv_flops = 2 * N * Cout_pad * KC * Lpad

    if fused:
        kern = functools.partial(_fused_kernel, taps=taps, halo=halo, wp=Wp,
                                 ph=ph, pw=pw, inv_hw=inv_hw)
        est = (2 * Cin_pad * TLin * in_item + 2 * tco * KC * in_item
               + 2 * TL * 4 + KC * TL * in_item + 3 * tco * TL * 4
               + 2 * tco * TL * out_item + (2 << 20))
        vmem_limit = int(min(max(int(est * 1.5), 48 << 20), cap * 7 // 8))
        cost = pl.CostEstimate(
            flops=int(conv_flops + 10 * N * Cout_pad * Lpad),
            transcendentals=int(N * Cout_pad),
            bytes_accessed=int(x_blocks.size * in_item + w2.size * in_item
                               + N * Cout_pad * Lpad * out_item))
        out = pl.pallas_call(
            kern,
            out_shape=jax.ShapeDtypeStruct((N, Cout_pad, Lpad), out_dtype),
            grid_spec=pltpu.PrefetchScalarGridSpec(
                num_scalar_prefetch=0,
                grid=(N, n_c),
                in_specs=[
                    pl.BlockSpec((1, 1, Cin_pad, TLin), lambda n, c: (n, 0, 0, 0)),
                    pl.BlockSpec((tco, KC), lambda n, c: (c, 0)),
                    pl.BlockSpec((tco, 1), lambda n, c: (c, 0)),
                    pl.BlockSpec((tco, 1), lambda n, c: (c, 0)),
                    pl.BlockSpec((1, TL), lambda n, c: (0, 0)),
                ],
                out_specs=pl.BlockSpec((1, tco, TL), lambda n, c: (n, c, 0)),
            ),
            compiler_params=pltpu.CompilerParams(
                dimension_semantics=("parallel", "parallel"),
                vmem_limit_bytes=vmem_limit),
            cost_estimate=cost,
        )(x_blocks, w2, g_col, b_col, mask)
    else:
        # ---- Pass 1: conv + per-channel sum / sumsq across L-tiles ----------
        kern1 = functools.partial(_conv_stats_kernel, taps=taps, halo=halo,
                                  wp=Wp, ph=ph, pw=pw)
        est1 = (2 * Cin_pad * TLin * in_item + 2 * tco * KC * in_item
                + 2 * TL * 4 + KC * TL * in_item + 3 * tco * TL * 4
                + 2 * tco * TL * 4 + (2 << 20))
        vmem1 = int(min(max(int(est1 * 1.5), 48 << 20), cap * 7 // 8))
        cost1 = pl.CostEstimate(
            flops=int(conv_flops), transcendentals=0,
            bytes_accessed=int(n_c * x_blocks.size * in_item + w2.size * in_item
                               + N * Cout_pad * Lpad * 4))
        conv_out, s1, s2 = pl.pallas_call(
            kern1,
            out_shape=(jax.ShapeDtypeStruct((N, Cout_pad, Lpad), jnp.float32),
                       jax.ShapeDtypeStruct((N, Cout_pad, 1), jnp.float32),
                       jax.ShapeDtypeStruct((N, Cout_pad, 1), jnp.float32)),
            grid_spec=pltpu.PrefetchScalarGridSpec(
                num_scalar_prefetch=0,
                grid=(N, n_c, n_l),
                in_specs=[
                    pl.BlockSpec((1, 1, Cin_pad, TLin), lambda n, c, l: (n, l, 0, 0)),
                    pl.BlockSpec((tco, KC), lambda n, c, l: (c, 0)),
                    pl.BlockSpec((1, TL), lambda n, c, l: (0, l)),
                ],
                out_specs=(
                    pl.BlockSpec((1, tco, TL), lambda n, c, l: (n, c, l)),
                    pl.BlockSpec((1, tco, 1), lambda n, c, l: (n, c, 0)),
                    pl.BlockSpec((1, tco, 1), lambda n, c, l: (n, c, 0)),
                ),
            ),
            compiler_params=pltpu.CompilerParams(
                dimension_semantics=("parallel", "parallel", "arbitrary"),
                vmem_limit_bytes=vmem1),
            cost_estimate=cost1,
        )(x_blocks, w2, mask)

        # ---- Pass 2: InstanceNorm + affine + LeakyReLU ----------------------
        kern2 = functools.partial(_norm_relu_kernel, inv_hw=inv_hw)
        est2 = (2 * tco * TL * 4 + 2 * tco * TL * out_item + tco * TL * 4
                + (1 << 20))
        vmem2 = int(min(max(int(est2 * 1.5), 32 << 20), cap * 7 // 8))
        cost2 = pl.CostEstimate(
            flops=int(6 * N * Cout_pad * Lpad),
            transcendentals=int(N * Cout_pad),
            bytes_accessed=int(N * Cout_pad * Lpad * (4 + out_item)))
        out = pl.pallas_call(
            kern2,
            out_shape=jax.ShapeDtypeStruct((N, Cout_pad, Lpad), out_dtype),
            grid_spec=pltpu.PrefetchScalarGridSpec(
                num_scalar_prefetch=0,
                grid=(N, n_c, n_l),
                in_specs=[
                    pl.BlockSpec((1, tco, TL), lambda n, c, l: (n, c, l)),
                    pl.BlockSpec((1, tco, 1), lambda n, c, l: (n, c, 0)),
                    pl.BlockSpec((1, tco, 1), lambda n, c, l: (n, c, 0)),
                    pl.BlockSpec((tco, 1), lambda n, c, l: (c, 0)),
                    pl.BlockSpec((tco, 1), lambda n, c, l: (c, 0)),
                ],
                out_specs=pl.BlockSpec((1, tco, TL), lambda n, c, l: (n, c, l)),
            ),
            compiler_params=pltpu.CompilerParams(
                dimension_semantics=("parallel", "parallel", "parallel"),
                vmem_limit_bytes=vmem2),
            cost_estimate=cost2,
        )(conv_out, s1, s2, g_col, b_col)

    # Drop channel/lane padding and the conv halo -> NCHW (no transposes).
    out = out[:, :Cout, :Lp].reshape(N, Cout, Hp, Wp)[:, :, ph:ph + H, pw:pw + W]
    return out


def _reference(x_nchw, weight, bias, gamma, beta):
    """Plain-JAX reference matching the PyTorch module (f32)."""
    y = lax.conv_general_dilated(
        x_nchw, weight, window_strides=(1, 1), padding="SAME",
        dimension_numbers=("NCHW", "OIHW", "NCHW"))
    y = y + bias.reshape(1, -1, 1, 1)
    mean = jnp.mean(y, axis=(2, 3), keepdims=True)
    var = jnp.mean((y - mean) ** 2, axis=(2, 3), keepdims=True)
    y = (y - mean) * lax.rsqrt(var + EPS)
    y = y * gamma.reshape(1, -1, 1, 1) + beta.reshape(1, -1, 1, 1)
    return jnp.where(y >= 0, y, NEG_SLOPE * y)


if __name__ == "__main__":
    key = jax.random.PRNGKey(0)
    N, Cin, H, W = 2, 4, 16, 16
    Cout, kh, kw = 8, 3, 3

    k_x, k_w, k_b, k_g, k_be = jax.random.split(key, 5)
    x = jax.random.normal(k_x, (N, Cin, H, W), dtype=jnp.float32)
    fan_in = Cin * kh * kw
    weight = jax.random.normal(k_w, (Cout, Cin, kh, kw), dtype=jnp.float32) / jnp.sqrt(fan_in)
    bias = 0.1 * jax.random.normal(k_b, (Cout,), dtype=jnp.float32)
    gamma = 1.0 + 0.1 * jax.random.normal(k_g, (Cout,), dtype=jnp.float32)
    beta = 0.1 * jax.random.normal(k_be, (Cout,), dtype=jnp.float32)

    ref = _reference(x, weight, bias, gamma, beta)

    # Fused single-tile path, exact f32 semantics.
    f32_fused = jax.jit(functools.partial(conv_dropout_norm_relu,
                                          matmul_dtype=jnp.float32))
    out = jax.block_until_ready(f32_fused(x, weight, bias, gamma, beta))
    assert out.shape == (N, Cout, H, W), out.shape
    assert jnp.allclose(out, ref, atol=2e-4, rtol=2e-4), \
        float(jnp.max(jnp.abs(out - ref)))

    # Spatially tiled two-pass path (forced small L-tile), exact f32 semantics.
    f32_tiled = jax.jit(functools.partial(conv_dropout_norm_relu,
                                          matmul_dtype=jnp.float32, l_tile=128))
    out_t = jax.block_until_ready(f32_tiled(x, weight, bias, gamma, beta))
    assert jnp.allclose(out_t, ref, atol=2e-4, rtol=2e-4), \
        float(jnp.max(jnp.abs(out_t - ref)))

    # Default path: bf16 MXU operands, f32 accumulation + f32 epilogue.
    bf16_fused = jax.jit(conv_dropout_norm_relu)
    out_b = jax.block_until_ready(bf16_fused(x, weight, bias, gamma, beta))
    assert jnp.allclose(out_b, ref, atol=1.5e-1, rtol=5e-2), \
        float(jnp.max(jnp.abs(out_b - ref)))

    # NOTE: dropout_op is None in the default nnU-Net props -> Identity here.
    print("KERNEL_OK")
</pallas_src>

<mosaic_0001>
module attributes {stable_mosaic.version = 11 : i64} {
  func.func @_fused_kernel(%arg0: i32, %arg1: i32, %arg2: memref<1x1x8x512xf32, #tpu.memory_space<vmem>>, %arg3: memref<8x72xf32, #tpu.memory_space<vmem>>, %arg4: memref<8x1xf32, #tpu.memory_space<vmem>>, %arg5: memref<8x1xf32, #tpu.memory_space<vmem>>, %arg6: memref<1x384xf32, #tpu.memory_space<vmem>>, %arg7: memref<1x8x384xf32, #tpu.memory_space<vmem>>) attributes {dimension_semantics = [#tpu.dimension_semantics<parallel>, #tpu.dimension_semantics<parallel>], iteration_bounds = array<i64: 2, 1>, scalar_prefetch = 0 : i64, scratch_operands = 0 : i64, tpu.core_type = #tpu.core_type<tc>, window_params = [{transform_indices = @transform_0, window_bounds = array<i64: 1, 1, 8, 512>}, {transform_indices = @transform_1, window_bounds = array<i64: 8, 72>}, {transform_indices = @transform_2, window_bounds = array<i64: 8, 1>}, {transform_indices = @transform_3, window_bounds = array<i64: 8, 1>}, {pipeline_mode = #tpu.pipeline_mode<synchronous>, transform_indices = @transform_4, window_bounds = array<i64: 1, 384>}, {transform_indices = @transform_5, window_bounds = array<i64: 1, 8, 384>}]} {
    %c0 = arith.constant 0 : index
    %c0_0 = arith.constant 0 : index
    %c0_1 = arith.constant 0 : index
    %c0_2 = arith.constant 0 : index
    %0 = vector.load %arg2[%c0, %c0_0, %c0_1, %c0_2] : memref<1x1x8x512xf32, #tpu.memory_space<vmem>>, vector<1x1x8x384xf32>
    %1 = vector.shape_cast %0 : vector<1x1x8x384xf32> to vector<8x384xf32>
    %c0_3 = arith.constant 0 : index
    %c0_4 = arith.constant 0 : index
    %c0_5 = arith.constant 0 : index
    %c1 = arith.constant 1 : index
    %2 = vector.load %arg2[%c0_3, %c0_4, %c0_5, %c1] : memref<1x1x8x512xf32, #tpu.memory_space<vmem>>, vector<1x1x8x384xf32>
    %3 = vector.shape_cast %2 : vector<1x1x8x384xf32> to vector<8x384xf32>
    %c0_6 = arith.constant 0 : index
    %c0_7 = arith.constant 0 : index
    %c0_8 = arith.constant 0 : index
    %c2 = arith.constant 2 : index
    %4 = vector.load %arg2[%c0_6, %c0_7, %c0_8, %c2] : memref<1x1x8x512xf32, #tpu.memory_space<vmem>>, vector<1x1x8x384xf32>
    %5 = vector.shape_cast %4 : vector<1x1x8x384xf32> to vector<8x384xf32>
    %c0_9 = arith.constant 0 : index
    %c0_10 = arith.constant 0 : index
    %c0_11 = arith.constant 0 : index
    %c18 = arith.constant 18 : index
    %6 = vector.load %arg2[%c0_9, %c0_10, %c0_11, %c18] : memref<1x1x8x512xf32, #tpu.memory_space<vmem>>, vector<1x1x8x384xf32>
    %7 = vector.shape_cast %6 : vector<1x1x8x384xf32> to vector<8x384xf32>
    %c0_12 = arith.constant 0 : index
    %c0_13 = arith.constant 0 : index
    %c0_14 = arith.constant 0 : index
    %c19 = arith.constant 19 : index
    %8 = vector.load %arg2[%c0_12, %c0_13, %c0_14, %c19] : memref<1x1x8x512xf32, #tpu.memory_space<vmem>>, vector<1x1x8x384xf32>
    %9 = vector.shape_cast %8 : vector<1x1x8x384xf32> to vector<8x384xf32>
    %c0_15 = arith.constant 0 : index
    %c0_16 = arith.constant 0 : index
    %c0_17 = arith.constant 0 : index
    %c20 = arith.constant 20 : index
    %10 = vector.load %arg2[%c0_15, %c0_16, %c0_17, %c20] : memref<1x1x8x512xf32, #tpu.memory_space<vmem>>, vector<1x1x8x384xf32>
    %11 = vector.shape_cast %10 : vector<1x1x8x384xf32> to vector<8x384xf32>
    %c0_18 = arith.constant 0 : index
    %c0_19 = arith.constant 0 : index
    %c0_20 = arith.constant 0 : index
    %c36 = arith.constant 36 : index
    %12 = vector.load %arg2[%c0_18, %c0_19, %c0_20, %c36] : memref<1x1x8x512xf32, #tpu.memory_space<vmem>>, vector<1x1x8x384xf32>
    %13 = vector.shape_cast %12 : vector<1x1x8x384xf32> to vector<8x384xf32>
    %c0_21 = arith.constant 0 : index
    %c0_22 = arith.constant 0 : index
    %c0_23 = arith.constant 0 : index
    %c37 = arith.constant 37 : index
    %14 = vector.load %arg2[%c0_21, %c0_22, %c0_23, %c37] : memref<1x1x8x512xf32, #tpu.memory_space<vmem>>, vector<1x1x8x384xf32>
    %15 = vector.shape_cast %14 : vector<1x1x8x384xf32> to vector<8x384xf32>
    %c0_24 = arith.constant 0 : index
    %c0_25 = arith.constant 0 : index
    %c0_26 = arith.constant 0 : index
    %c38 = arith.constant 38 : index
    %16 = vector.load %arg2[%c0_24, %c0_25, %c0_26, %c38] : memref<1x1x8x512xf32, #tpu.memory_space<vmem>>, vector<1x1x8x384xf32>
    %17 = vector.shape_cast %16 : vector<1x1x8x384xf32> to vector<8x384xf32>
    %18 = tpu.concatenate %1, %3, %5, %7, %9, %11, %13, %15, %17 in 0 : vector<8x384xf32>, vector<8x384xf32>, vector<8x384xf32>, vector<8x384xf32>, vector<8x384xf32>, vector<8x384xf32>, vector<8x384xf32>, vector<8x384xf32>, vector<8x384xf32> -> vector<72x384xf32>
    %c0_27 = arith.constant 0 : index
    %c0_28 = arith.constant 0 : index
    %19 = vector.load %arg3[%c0_27, %c0_28] : memref<8x72xf32, #tpu.memory_space<vmem>>, vector<8x72xf32>
    %cst = arith.constant dense<0.000000e+00> : vector<8x384xf32>
    %20 = tpu.matmul %19, %18, %cst {dimension_numbers = #tpu.dot_dimension_numbers<[1], [0], [0], [1], [0, 0, 1, 1], [], []>} : vector<8x72xf32>, vector<72x384xf32>, vector<8x384xf32> -> vector<8x384xf32>
    %c0_29 = arith.constant 0 : index
    %c0_30 = arith.constant 0 : index
    %21 = vector.load %arg6[%c0_29, %c0_30] : memref<1x384xf32, #tpu.memory_space<vmem>>, vector<1x384xf32>
    %22 = vector.broadcast %21 : vector<1x384xf32> to vector<8x384xf32>
    %23 = arith.mulf %20, %22 : vector<8x384xf32>
    %cst_31 = arith.constant dense<0.000000e+00> : vector<8xf32>
    %24 = vector.multi_reduction <add>, %23, %cst_31 [1] : vector<8x384xf32> to vector<8xf32>
    %25 = vector.shape_cast %24 : vector<8xf32> to vector<8x1xf32>
    %26 = arith.mulf %23, %20 : vector<8x384xf32>
    %cst_32 = arith.constant dense<0.000000e+00> : vector<8xf32>
    %27 = vector.multi_reduction <add>, %26, %cst_32 [1] : vector<8x384xf32> to vector<8xf32>
    %28 = vector.shape_cast %27 : vector<8xf32> to vector<8x1xf32>
    %cst_33 = arith.constant 3.906250e-03 : f32
    %29 = vector.broadcast %cst_33 : f32 to vector<8x1xf32>
    %30 = arith.mulf %25, %29 : vector<8x1xf32>
    %cst_34 = arith.constant 3.906250e-03 : f32
    %31 = vector.broadcast %cst_34 : f32 to vector<8x1xf32>
    %32 = arith.mulf %28, %31 : vector<8x1xf32>
    %33 = arith.mulf %30, %30 : vector<8x1xf32>
    %34 = arith.subf %32, %33 : vector<8x1xf32>
    %cst_35 = arith.constant 0.000000e+00 : f32
    %35 = vector.broadcast %cst_35 : f32 to vector<8x1xf32>
    %36 = arith.maximumf %34, %35 : vector<8x1xf32>
    %cst_36 = arith.constant 9.99999974E-6 : f32
    %37 = vector.broadcast %cst_36 : f32 to vector<8x1xf32>
    %38 = arith.addf %36, %37 : vector<8x1xf32>
    %39 = math.rsqrt %38 : vector<8x1xf32>
    %c0_37 = arith.constant 0 : index
    %c0_38 = arith.constant 0 : index
    %40 = vector.load %arg4[%c0_37, %c0_38] : memref<8x1xf32, #tpu.memory_space<vmem>>, vector<8x1xf32>
    %41 = arith.mulf %39, %40 : vector<8x1xf32>
    %c0_39 = arith.constant 0 : index
    %c0_40 = arith.constant 0 : index
    %42 = vector.load %arg5[%c0_39, %c0_40] : memref<8x1xf32, #tpu.memory_space<vmem>>, vector<8x1xf32>
    %43 = arith.mulf %30, %41 : vector<8x1xf32>
    %44 = arith.subf %42, %43 : vector<8x1xf32>
    %45 = vector.broadcast %41 : vector<8x1xf32> to vector<8x384xf32>
    %46 = arith.mulf %20, %45 : vector<8x384xf32>
    %47 = vector.broadcast %44 : vector<8x1xf32> to vector<8x384xf32>
    %48 = arith.addf %46, %47 : vector<8x384xf32>
    %cst_41 = arith.constant 0.000000e+00 : f32
    %49 = vector.broadcast %cst_41 : f32 to vector<8x384xf32>
    %50 = arith.cmpf oge, %48, %49 : vector<8x384xf32>
    %cst_42 = arith.constant 0.00999999977 : f32
    %51 = vector.broadcast %cst_42 : f32 to vector<8x384xf32>
    %52 = arith.mulf %51, %48 : vector<8x384xf32>
    %53 = arith.select %50, %48, %52 : vector<8x384xi1>, vector<8x384xf32>
    %c0_43 = arith.constant 0 : index
    %c0_44 = arith.constant 0 : index
    %c0_45 = arith.constant 0 : index
    %54 = vector.load %arg7[%c0_43, %c0_44, %c0_45] : memref<1x8x384xf32, #tpu.memory_space<vmem>>, vector<1x8x384xf32>
    %55 = vector.shape_cast %54 : vector<1x8x384xf32> to vector<8x384xf32>
    %56 = vector.shape_cast %53 : vector<8x384xf32> to vector<1x8x384xf32>
    tpu.vector_store %arg7[%c0_43, %c0_44, %c0_45], %56 {strides = array<i32>} : memref<1x8x384xf32, #tpu.memory_space<vmem>>, vector<1x8x384xf32>,
    return
  }
  func.func @transform_0(%arg0: i32, %arg1: i32) -> (i32, i32, i32, i32) {
    %c0_i32 = arith.constant 0 : i32
    %c0_i32_0 = arith.constant 0 : i32
    %c0_i32_1 = arith.constant 0 : i32
    %c0_i32_2 = arith.constant 0 : i32
    return %arg0, %c0_i32, %c0_i32_0, %c0_i32_1 : i32, i32, i32, i32
  }
  func.func @transform_1(%arg0: i32, %arg1: i32) -> (i32, i32) {
    %c0_i32 = arith.constant 0 : i32
    %c0_i32_0 = arith.constant 0 : i32
    return %arg1, %c0_i32 : i32, i32
  }
  func.func @transform_2(%arg0: i32, %arg1: i32) -> (i32, i32) {
    %c0_i32 = arith.constant 0 : i32
    %c0_i32_0 = arith.constant 0 : i32
    return %arg1, %c0_i32 : i32, i32
  }
  func.func @transform_3(%arg0: i32, %arg1: i32) -> (i32, i32) {
    %c0_i32 = arith.constant 0 : i32
    %c0_i32_0 = arith.constant 0 : i32
    return %arg1, %c0_i32 : i32, i32
  }
  func.func @transform_4(%arg0: i32, %arg1: i32) -> (i32, i32) {
    %c0_i32 = arith.constant 0 : i32
    %c0_i32_0 = arith.constant 0 : i32
    %c0_i32_1 = arith.constant 0 : i32
    return %c0_i32, %c0_i32_0 : i32, i32
  }
  func.func @transform_5(%arg0: i32, %arg1: i32) -> (i32, i32, i32) {
    %c0_i32 = arith.constant 0 : i32
    %c0_i32_0 = arith.constant 0 : i32
    return %arg0, %arg1, %c0_i32 : i32, i32, i32
  }
}

</mosaic_0001>

<bundles_post_ra>
// kernel: conv_dropout_norm_relu.1
= control target key start
LH: loop header
LB: loop body
LE: loop exit
PB: predicated region body
PF: predicated region fallthrough
CT: control target
= control target key end

     0   :  { %s1027_s18 = smov 0   ;;  %s1029_s19 = smov 0   ;;  %s1117_s0 = inlined_call_operand.vmem [shape: f32[2,1,8,512], index: 0, kind: input, shape index: {}]   ;;  %s1118_s1 = inlined_call_operand.vmem [shape: f32[8,72], index: 1, kind: input, shape index: {}]   ;;  %s1119_s2 = inlined_call_operand.vmem [shape: f32[8,1], index: 2, kind: input, shape index: {}]   ;;  %s1120_s3 = inlined_call_operand.vmem [shape: f32[8,1], index: 3, kind: input, shape index: {}]   ;;  %s1121_s4 = inlined_call_operand.vmem [shape: f32[1,384], index: 4, kind: input, shape index: {}]   ;;  %s1122_s5 = inlined_call_operand.vmem [shape: f32[2,8,384], index: 5, kind: output, shape index: {}]  }
   0x1   :  { %s1031_s20 = smov 0  }
   0x2 LB: > { %s27_s21 = sadd.s32 1, %s979_s19  ;;  %p782_p0 = scmp.ge.s32.totalorder %s983_s20, 1  ;;  %s983_s20 = sphi %s1031_s20, %s15_s20   ;;  %s979_s19 = sphi %s1029_s19, %s1124_s19   ;;  %s975_s18 = sphi %s1027_s18, %s1123_s18  }
   0x3   : > { %p29_p1 = scmp.ge.s32.totalorder %s27_s21, 2  ;;  %p228_p2 = scmp.lt.s32.totalorder %s983_s20, 3 }
   0x5   : > { %s1126_s21 = smov (%p29_p1, %s27_s21), 0  ;;  %p229_p3 = pnand %p782_p0, %p228_p2 }
   0x6   : > { %p272_p4 = scmp.lt.s32.totalorder (!%p229_p3), %s975_s18, 1  ;;  %v985_v0 = vmov (!%p229_p3), 0.0|0.0   ;;  %s986_s26 = smov (!%p229_p3), 126   ;;  %v991_v7 = vmov (!%p229_p3), 0.0   ;;  %vm994_vm0 = vmmov (!%p229_p3), 0   ;;  %vm317_vm1 = vcmask (!%p229_p3), 1039360  }
   0x7   : > { %232 = sbr.rel (%p229_p3) target bundleno = 692 (0x2b4), region = 40  ;;  %838 = vmatprep.subr.bf16.mxu1 (!%p229_p3), %v985_v0  ;;  %s987_s27 = smov (!%p229_p3), 127   ;;  %498 = vmatprep.mubr.f32.mxu0 (!%p229_p3), %v991_v7  ;;  %vm332_vm2 = vcmask (!%p229_p3), 1031168   ;;  %vm347_vm3 = vcmask (!%p229_p3), 900096   ;;  %vm362_vm4 = vcmask (!%p229_p3), 891904   ;;  %vm377_vm5 = vcmask (!%p229_p3), 883712  }
   0x8   : > { %s988_s28 = smov (!%p229_p3), 110   ;;  %s989_s29 = smov (!%p229_p3), 108   ;;  %819 = vmatprep.mubr.msk.f32.mxu1 (!%p229_p3), %vm994_vm0, %v991_v7  ;;  %vm392_vm6 = vcmask (!%p229_p3), 752640   ;;  %vm407_vm7 = vcmask (!%p229_p3), 744448   ;;  %vm422_vm8 = vcmask (!%p229_p3), 736256   ;;  %vm430_vm9 = vcmask (!%p229_p3), 588800  }
   0x9   : > { %s990_s30 = smov (!%p229_p3), 109   ;;  %s992_s6 = smov (!%p229_p3), 91  }
   0xa   : > { %s993_s7 = smov (!%p229_p3), 92   ;;  %s995_s8 = smov (!%p229_p3), 90  }
   0xe   : > { %s1128_s18 = smov (!%p272_p4, %s975_s18), 1 }
   0xf   : > { %s790_s22 = sshll.u32 %s1128_s18, 5  ;;  %s850_s17 = smul.u32 24, %s1128_s18 }
  0x10   : > { %s276_s25 = scalar_lea.vmem %s1117_s0, %s790_s22 }
  0x11   : > { %v302_v1 = vld [vmem:[%s276_s25 + $0x8] sm:$0xff]  ;;  %v1052_v2 = vld [vmem:[%s276_s25 + $0x10] sm:$0xff]  ;;  %v1054_v3 = vld [vmem:[%s276_s25] sm:$0xff]  ;;  %s297_s24 = scalar_lea.vmem %s1122_s5, %s850_s17 }
  0x12   : > { %v897_v4 = vpack.i.bf16 %v1052_v2, %v302_v1  ;;  %v304_v5 = vld [vmem:[%s276_s25 + $0x18] sm:$0xff] }
  0x13   : > { %v892_v6 = vpack.i.bf16 %v304_v5, %v1054_v3 }
  0x14   : > { %898 = vrot.lane.b32.xlu1 %v897_v4, %s986_s26  ;;  %888 = vrot.lane.b32.xlu0 %v897_v4, %s987_s27 }
  0x18   : > { %903 = vrot.lane.b32.xlu1 %v897_v4, %s988_s28  ;;  %893 = vrot.lane.b32.xlu0 %v892_v6, %s987_s27 }
  0x1c   : > { %913 = vrot.lane.b32.xlu1 %v892_v6, %s988_s28  ;;  %908 = vrot.lane.b32.xlu0 %v892_v6, %s986_s26 }
  0x20   : > { %923 = vrot.lane.b32.xlu1 %v897_v4, %s989_s29  ;;  %918 = vrot.lane.b32.xlu0 %v897_v4, %s990_s30 }
  0x24   : > { %933 = vrot.lane.b32.xlu1 %v892_v6, %s989_s29  ;;  %928 = vrot.lane.b32.xlu0 %v892_v6, %s990_s30 }
  0x28   : > { %943 = vrot.lane.b32.xlu1 %v897_v4, %s992_s6  ;;  %938 = vrot.lane.b32.xlu0 %v897_v4, %s993_s7 }
  0x2c   : > { %953 = vrot.lane.b32.xlu1 %v892_v6, %s992_s6  ;;  %948 = vrot.lane.b32.xlu0 %v892_v6, %s993_s7 }
  0x30   : > { %418 = vrot.lane.b32.xlu1 %v1052_v2, %s995_s8  ;;  %416 = vrot.lane.b32.xlu0 %v302_v1, %s995_s8 }
  0x34   : > { %420 = vrot.lane.b32.xlu1 %v304_v5, %s995_s8  ;;  %414 = vrot.lane.b32.xlu0 %v1054_v3, %s995_s8 }
  0x86   : > { %v899_v8 = vpop.permute.xlu1 %898  ;;  %v889_v9 = vpop.permute.xlu0 %888 }
  0x87   : > { %v891_v10 = vunpack.i.h.bf16 %v889_v9  ;;  %v890_v11 = vunpack.i.l.bf16 %v889_v9  ;;  %v901_v12 = vunpack.i.h.bf16 %v899_v8  ;;  %v900_v13 = vunpack.i.l.bf16 %v899_v8 }
  0x89   : > { %v319_v14 = vsel %vm317_vm1, %v890_v11, %v891_v10  ;;  %v334_v24 = vsel %vm332_vm2, %v900_v13, %v901_v12 }
  0x8a   : > { %v904_v15 = vpop.permute.xlu1 %903  ;;  %v894_v16 = vpop.permute.xlu0 %893  ;;  %v822_v17 = vpack.c.bf16 %v319_v14, %v302_v1 }
  0x8b   : > { %v906_v18 = vunpack.i.h.bf16 %v904_v15  ;;  %v905_v19 = vunpack.i.l.bf16 %v904_v15  ;;  %v896_v20 = vunpack.i.h.bf16 %v894_v16  ;;  %v895_v21 = vunpack.i.l.bf16 %v894_v16 }
  0x8c   : > { %823 = vmatprep.subr.bf16.mxu0 %v822_v17 }
  0x8d   : > { %v318_v22 = vsel %vm317_vm1, %v895_v21, %v890_v11  ;;  %v320_v23 = vsel %vm317_vm1, %v891_v10, %v896_v20  ;;  %v349_v25 = vsel %vm347_vm3, %v905_v19, %v906_v18 }
  0x8e   : > { %v914_v26 = vpop.permute.xlu1 %913  ;;  %v909_v27 = vpop.permute.xlu0 %908  ;;  %v824_v28 = vpack.c.bf16 %v318_v22, %v1054_v3  ;;  %v839_v29 = vpack.c.bf16 %v320_v23, %v1052_v2  ;;  %v826_v30 = vpack.c.bf16 %v349_v25, %v334_v24  ;;  %v429_v25 = vld [vmem:[%s1118_s1] sm:$0xff] }
  0x8f   : > { %v916_v31 = vunpack.i.h.bf16 %v914_v26  ;;  %v915_v32 = vunpack.i.l.bf16 %v914_v26  ;;  %v911_v33 = vunpack.i.h.bf16 %v909_v27  ;;  %v910_v34 = vunpack.i.l.bf16 %v909_v27 }
  0x90   : > { %825 = vmatpush1.bf16.msra.mxu0 %v824_v28  ;;  %840 = vmatpush3.bf16.msra.mxu1 %v839_v29  ;;  %v577_v28 = vlaneseq }
  0x91   : > { %827 = vmatprep.subr.bf16.mxu0 %v826_v30  ;;  %841 = vmatprep.subr.bf16.mxu1 %v985_v0  ;;  %v333_v35 = vsel %vm332_vm2, %v910_v34, %v900_v13  ;;  %v348_v36 = vsel %vm347_vm3, %v915_v32, %v905_v19  ;;  %v335_v37 = vsel %vm332_vm2, %v901_v12, %v911_v33 }
  0x92   : > { %v924_v38 = vpop.permute.xlu1 %923  ;;  %v919_v39 = vpop.permute.xlu0 %918  ;;  %v828_v40 = vpack.c.bf16 %v348_v36, %v333_v35  ;;  %v350_v41 = vsel %vm347_vm3, %v906_v18, %v916_v31  ;;  %v578_v29 = vshrl.u32 %v577_v28, 7 }
  0x93   : > { %v926_v42 = vunpack.i.h.bf16 %v924_v38  ;;  %v925_v43 = vunpack.i.l.bf16 %v924_v38  ;;  %v921_v44 = vunpack.i.h.bf16 %v919_v39  ;;  %v920_v45 = vunpack.i.l.bf16 %v919_v39 }
  0x94   : > { %829 = vmatpush1.bf16.msra.mxu0 %v828_v40  ;;  %v842_v46 = vpack.c.bf16 %v350_v41, %v335_v37  ;;  %v579_v30 = vsub.s32 0, %v578_v29  ;;  %v583_v31 = vsub.s32 1, %v578_v29  ;;  %v587_v32 = vsub.s32 2, %v578_v29 }
  0x95   : > { %v364_v47 = vsel %vm362_vm4, %v920_v45, %v921_v44  ;;  %v379_v48 = vsel %vm377_vm5, %v925_v43, %v926_v42 }
  0x96   : > { %843 = vmatpush3.bf16.msra.mxu1 %v842_v46  ;;  %v934_v49 = vpop.permute.xlu1 %933  ;;  %v929_v50 = vpop.permute.xlu0 %928  ;;  %v830_v51 = vpack.c.bf16 %v379_v48, %v364_v47 }
  0x97   : > { %v936_v52 = vunpack.i.h.bf16 %v934_v49  ;;  %v935_v53 = vunpack.i.l.bf16 %v934_v49  ;;  %v931_v54 = vunpack.i.h.bf16 %v929_v50  ;;  %v930_v55 = vunpack.i.l.bf16 %v929_v50  ;;  %844 = vmatprep.subr.bf16.mxu1 %v985_v0 }
  0x98   : > { %831 = vmatprep.subr.bf16.mxu0 %v830_v51  ;;  %v996_v50 = vmov 0  }
  0x99   : > { %v363_v56 = vsel %vm362_vm4, %v930_v55, %v920_v45  ;;  %v378_v57 = vsel %vm377_vm5, %v935_v53, %v925_v43  ;;  %v365_v58 = vsel %vm362_vm4, %v921_v44, %v931_v54  ;;  %v380_v59 = vsel %vm377_vm5, %v926_v42, %v936_v52  ;;  %957 = vset.pattern.permute.xlu0 %v996_v50 }
  0x9a   : > { %v944_v60 = vpop.permute.xlu1 %943  ;;  %v939_v61 = vpop.permute.xlu0 %938  ;;  %v832_v62 = vpack.c.bf16 %v378_v57, %v363_v56  ;;  %v845_v63 = vpack.c.bf16 %v380_v59, %v365_v58  ;;  %958 = vset.pattern.permute.xlu1 %v996_v50  ;;  %v613_v59 = vld [vmem:[%s1119_s2] sm:$0xff] }
  0x9b   : > { %v946_v1 = vunpack.i.h.bf16 %v944_v60  ;;  %v945_v2 = vunpack.i.l.bf16 %v944_v60  ;;  %v941_v3 = vunpack.i.h.bf16 %v939_v61  ;;  %v940_v4 = vunpack.i.l.bf16 %v939_v61 }
  0x9c   : > { %833 = vmatpush1.bf16.msra.mxu0 %v832_v62  ;;  %846 = vmatpush3.bf16.msra.mxu1 %v845_v63  ;;  %v615_v62 = vld [vmem:[%s1120_s3] sm:$0xff] }
  0x9d   : > { %v394_v5 = vsel %vm392_vm6, %v940_v4, %v941_v3  ;;  %v409_v6 = vsel %vm407_vm7, %v945_v2, %v946_v1  ;;  %847 = vmatprep.subr.bf16.mxu1 %v985_v0 }
  0x9e   : > { %v954_v8 = vpop.permute.xlu1 %953  ;;  %v949_v9 = vpop.permute.xlu0 %948  ;;  %v834_v10 = vpack.c.bf16 %v409_v6, %v394_v5 }
  0x9f   : > { %v956_v11 = vunpack.i.h.bf16 %v954_v8  ;;  %v955_v12 = vunpack.i.l.bf16 %v954_v8  ;;  %v951_v13 = vunpack.i.h.bf16 %v949_v9  ;;  %v950_v14 = vunpack.i.l.bf16 %v949_v9 }
  0xa0   : > { %835 = vmatprep.subr.bf16.mxu0 %v834_v10 }
  0xa1   : > { %v393_v15 = vsel %vm392_vm6, %v950_v14, %v940_v4  ;;  %v408_v16 = vsel %vm407_vm7, %v955_v12, %v945_v2  ;;  %v395_v17 = vsel %vm392_vm6, %v941_v3, %v951_v13  ;;  %v410_v18 = vsel %vm407_vm7, %v946_v1, %v956_v11 }
  0xa2   : > { %v419_v19 = vpop.permute.xlu1 %418  ;;  %v417_v20 = vpop.permute.xlu0 %416  ;;  %v836_v0 = vpack.c.bf16 %v408_v16, %v393_v15  ;;  %v848_v21 = vpack.c.bf16 %v410_v18, %v395_v17 }
  0xa3   : > { %v424_v22 = vsel %vm422_vm8, %v417_v20, %v419_v19 }
  0xa4   : > { %837 = vmatpush1.bf16.msra.mxu0 %v836_v0  ;;  %849 = vmatpush3.bf16.msra.mxu1 %v848_v21 }
  0xa5   : > { %450 = vmatprep.subr.mxu0 %v424_v22  ;;  %817 = vmatprep.subr.mxu1 %v991_v7  ;;  %v575_v7 = vld [vmem:[%s1121_s4] sm:$0x7] }
  0xa6   : > { %v421_v23 = vpop.permute.xlu1 %420  ;;  %v415_v24 = vpop.permute.xlu0 %414  ;;  %v580_v33 = vrot.slane %v575_v7, %v579_v30  ;;  %v584_v34 = vrot.slane %v575_v7, %v583_v31  ;;  %v588_v35 = vrot.slane %v575_v7, %v587_v32 }
  0xa7   : > { %v423_v26 = vsel %vm422_vm8, %v415_v24, %v417_v20  ;;  %v425_v27 = vsel %vm422_vm8, %v419_v19, %v421_v23 }
  0xa8   : > { %451 = vmatpush1.msra.mxu0 %v423_v26  ;;  %818 = vmatpush3.msra.mxu1 %v425_v27 }
  0xa9   : > { %786 = vmatmul.mubr.msk.f32.vlgmr.msra.gmra.mrb[0].mxu0 %vm430_vm9, %v429_v25  ;;  %820 = vmatmul.mubr.msk.f32.vlgmr.msra.gmra.mrb[0].mxu1 %vm430_vm9, %v429_v25 }
 0x17c   : > { %v500_v36 = vpop.f32.mrb[0].mxu0  ;;  %v571_v37 = vpop.f32.mrb[0].mxu1 }
 0x17d   : > { %v592_v38 = vmul.f32 %v580_v33, %v500_v36  ;;  %v502_v39 = vpop.f32.mrb[1].mxu0  ;;  %v821_v40 = vpop.f32.mrb[1].mxu1  ;;  %v594_v42 = vmul.f32 %v588_v35, %v571_v37 }
 0x17e   : > { %v593_v41 = vmul.f32 %v584_v34, %v502_v39 }
 0x17f   : > { %v599_v43 = vmul.f32 %v592_v38, %v500_v36  ;;  %v601_v47 = vmul.f32 %v594_v42, %v571_v37 }
 0x180   : > { %v600_v44 = vmul.f32 %v593_v41, %v502_v39  ;;  %v595_v45 = vadd.f32 %v593_v41, %v592_v38 }
 0x182   : > { %v596_v46 = vadd.f32 %v595_v45, %v594_v42  ;;  %v602_v48 = vadd.f32 %v600_v44, %v599_v43 }
 0x184   : > { %597 = vadd.xlane.f32.xlu0 %v596_v46  ;;  %v603_v49 = vadd.f32 %v602_v48, %v601_v47 }
 0x186   : > { %604 = vadd.xlane.f32.xlu1 %v603_v49 }
 0x211   : > { %v598_v51 = vpop.xlane.xlu0 %597 }
 0x212   : > { %v606_v52 = vmul.f32 0.00390625, %v598_v51 }
 0x213   : > { %v605_v53 = vpop.xlane.xlu1 %604 }
 0x214   : > { %v608_v54 = vmul.f32 %v606_v52, %v606_v52  ;;  %v607_v55 = vmul.f32 0.00390625, %v605_v53 }
 0x216   : > { %v609_v56 = vsub.f32 %v607_v55, %v608_v54 }
 0x218   : > { %v610_v57 = vmax.f32 %v609_v56, 0.0 }
 0x21a   : > { %v611_v58 = vadd.f32 1e-05, %v610_v57 }
 0x21c   : > { %959 = vrsqrt.f32 %v611_v58 }
 0x226   : > { %v960_v60 = vpop.eup %959 }
 0x227   : > { %v614_v61 = vmul.f32 %v960_v60, %v613_v59 }
 0x229   : > { %620 = vperm.xlu0 %957, %v614_v61   ;;  %v616_v63 = vmul.f32 %v614_v61, %v606_v52 }
 0x22b   : > { %v617_v1 = vsub.f32 %v615_v62, %v616_v63 }
 0x22d   : > { %628 = vperm.xlu1 %958, %v617_v1  }
 0x2a8   : > { %v621_v2 = vpop.permute.xlu0 %620 }
 0x2a9   : > { %v623_v3 = vmul.f32 %v621_v2, %v500_v36  ;;  %v624_v4 = vmul.f32 %v621_v2, %v502_v39  ;;  %v625_v5 = vmul.f32 %v621_v2, %v571_v37 }
 0x2ac   : > { %v629_v6 = vpop.permute.xlu1 %628 }
 0x2ad   : > { %v631_v8 = vadd.f32 %v629_v6, %v623_v3  ;;  %v632_v9 = vadd.f32 %v629_v6, %v624_v4  ;;  %v633_v10 = vadd.f32 %v629_v6, %v625_v5 }
 0x2af   : > { %vm634_vm10 = vcmp.ge.f32.partialorder %v631_v8, 0.0  ;;  %vm635_vm11 = vcmp.ge.f32.partialorder %v632_v9, 0.0  ;;  %vm636_vm12 = vcmp.ge.f32.partialorder %v633_v10, 0.0  ;;  %v637_v11 = vmul.f32 0.01, %v631_v8 }
 0x2b0   : > { %v638_v12 = vmul.f32 0.01, %v632_v9  ;;  %v639_v13 = vmul.f32 0.01, %v633_v10 }
 0x2b1   : > { %v640_v14 = vsel %vm634_vm10, %v631_v8, %v637_v11 }
 0x2b2   : > { %v641_v15 = vsel %vm635_vm11, %v632_v9, %v638_v12  ;;  %v642_v16 = vsel %vm636_vm12, %v633_v10, %v639_v13  ;;  %643 = vst [vmem:[%s297_s24] sm:$0xff] %v640_v14 }
 0x2b3   : > { %644 = vst [vmem:[%s297_s24 + $0x8] sm:$0xff] %v641_v15  ;;  %645 = vst [vmem:[%s297_s24 + $0x10] sm:$0xff] %v642_v16 }
 0x2b4 PF: > { %s15_s20 = sadd.s32 1, %s983_s20   ;;  %s1123_s18 = smov %s979_s19 }
 0x2b5   : > { %p12_p5 = scmp.ge.s32.totalorder %s15_s20, 4   ;;  %s1124_s19 = smov %s1126_s21 }
 0x2b7   :  { %14 = sbr.rel (!%p12_p5) target bundleno = 2 (0x2), region = 79 }

</bundles_post_ra>
